<compile_context>
chip_gen: v7x
topology: tpu7x:2x2x1
jax: 0.10.0
libtpu: 0.0.40
codegen_flags: <defaults>
</compile_context>

<pallas_src>
import numpy as np
import jax
import jax.numpy as jnp
from jax.experimental import pallas as pl
from jax.experimental.pallas import tpu as pltpu


# ----------------------------- Pallas kernels ------------------------------ #

def _gridmask_mul_kernel(x_ref, m_ref, o_ref):
    # x_ref: (TB, TL), m_ref: (1, TL) -> sublane broadcast over the batch axis.
    o_ref[...] = x_ref[...] * m_ref[...]


def _gridmask_offset_kernel(x_ref, m_ref, offm_ref, o_ref):
    # offm = offset * (1 - mask) is precomputed outside the kernel, so the body
    # is only mul + add per element (no f32 FMA on v5e/v6e VPU -> every op counts).
    o_ref[...] = x_ref[...] * m_ref[...] + offm_ref[...]


# ------------------------------ tiling policy ------------------------------ #

def _choose_tiles(b, l, itemsize, target_bytes=2 * 1024 * 1024):
    """Pick (tile_b, tile_l) giving lane-dense ~1-2 MiB x blocks.

    Block-shape rule: each of the last two dims must be a multiple of (8, 128)
    or equal the full array extent.  Sizing keeps 2 input + 2 output
    double-buffered copies under v5e's 16 MiB scoped-VMEM default and far under
    v7x's 64 MiB physical VMEM.
    """
    # Lane tiling only if one full row-chunk is already over budget and H*W is a
    # clean multiple of 128; otherwise take the full (lane-dense) row.
    if l % 128 == 0 and l * itemsize > target_bytes:
        tile_l = max(128, (target_bytes // (8 * itemsize)) // 128 * 128)
        tile_l = min(tile_l, l)
    else:
        tile_l = l

    rows_budget = max(1, target_bytes // (tile_l * itemsize))
    if rows_budget >= b:
        tile_b = b
        # Keep >= 2 grid blocks when the batch is big enough so v7x's two
        # TensorCores both get work (no effect on single-TC v5e/v6e).
        if tile_l == l and b >= 16:
            tile_b = min(b, ((b + 1) // 2 + 7) // 8 * 8)
    else:
        tile_b = min(b, max(8, (rows_budget // 8) * 8))
    return tile_b, tile_l


# --------------------------------- wrapper ---------------------------------- #

def apply_gridmask(x, mask, offset=None):
    """x: (N, C, H, W); mask: (H, W); optional offset: (H, W)."""
    n, c, h, w = x.shape
    b, l = n * c, h * w
    itemsize = jnp.dtype(x.dtype).itemsize

    # Lane-dense 2D layout: (N*C, H*W); mask broadcasts from (1, H*W).
    xf = x.reshape(b, l)
    mf = mask.astype(x.dtype).reshape(1, l)

    tile_b, tile_l = _choose_tiles(b, l, itemsize)
    # Lane-chunk OUTER, batch INNER: the mask block index only changes on the
    # outer axis, so its (1, tile_l) tile stays resident across batch steps.
    grid = (pl.cdiv(l, tile_l), pl.cdiv(b, tile_b))

    x_spec = pl.BlockSpec((tile_b, tile_l), lambda li, bi: (bi, li))
    m_spec = pl.BlockSpec((1, tile_l), lambda li, bi: (0, li))

    if offset is None:
        kernel = _gridmask_mul_kernel
        in_specs = [x_spec, m_spec]
        args = (xf, mf)
    else:
        kernel = _gridmask_offset_kernel
        # Fold offset * (1 - mask) into one per-image (1, H*W) constant.
        offm = (offset.astype(x.dtype) * (1 - mask.astype(x.dtype))).reshape(1, l)
        in_specs = [x_spec, m_spec, m_spec]
        args = (xf, mf, offm)

    out = pl.pallas_call(
        kernel,
        out_shape=jax.ShapeDtypeStruct((b, l), x.dtype),
        grid=grid,
        in_specs=in_specs,
        out_specs=x_spec,
        compiler_params=pltpu.CompilerParams(
            dimension_semantics=("parallel", "parallel"),
            vmem_limit_bytes=32 * 1024 * 1024,
        ),
    )(*args)
    return out.reshape(n, c, h, w)


# ------------------------- host-side mask generation ----------------------- #

def make_gridmask_mask(h, w, rng, use_h=True, use_w=True, rotate=1,
                       ratio=0.5, mode=1):
    """Deterministic replica of the numpy/PIL mask construction in GridMask."""
    hh = int(1.5 * h)
    ww = int(1.5 * w)
    d = rng.randint(2, h)
    l = min(max(int(d * ratio + 0.5), 1), d - 1)
    mask = np.ones((hh, ww), np.float32)
    st_h = rng.randint(d)
    st_w = rng.randint(d)
    if use_h:
        for i in range(hh // d):
            s = d * i + st_h
            t = min(s + l, hh)
            mask[s:t, :] *= 0
    if use_w:
        for i in range(ww // d):
            s = d * i + st_w
            t = min(s + l, ww)
            mask[:, s:t] *= 0
    r = rng.randint(rotate)
    # Default rotate=1 => r == 0 always, i.e. identity rotation.
    # TODO(synk): PIL Image.rotate with r != 0 (arbitrary-angle nearest resample)
    # has no in-script equivalent; only the default (identity) case is supported.
    assert r == 0, "only rotate=1 (identity rotation) is implemented"
    mask = np.uint8(mask).astype(np.float32)           # mirrors Image.fromarray(np.uint8(...))
    mask = mask[(hh - h) // 2:(hh - h) // 2 + h,
                (ww - w) // 2:(ww - w) // 2 + w]
    if mode == 1:
        mask = 1.0 - mask
    return mask


# ----------------------------------- main ----------------------------------- #

if __name__ == "__main__":
    # GridMask defaults: use_h=True, use_w=True, rotate=1, offset=False,
    # ratio=0.5, mode=1, p=0.7.  We exercise the training branch where the
    # random gate (np.random.rand() > p) fired, i.e. the mask IS applied.
    n, c, h, w = 2, 4, 16, 16

    key = jax.random.PRNGKey(0)
    x = jax.random.normal(key, (n, c, h, w), dtype=jnp.float32)

    rng = np.random.RandomState(0)  # deterministic host-side randomness
    mask_np = make_gridmask_mask(h, w, rng)
    mask = jnp.asarray(mask_np, dtype=jnp.float32)

    # Default path: out = x * mask.
    out = jax.block_until_ready(apply_gridmask(x, mask))
    ref = x * mask[None, None, :, :]
    assert out.shape == (n, c, h, w)
    assert jnp.array_equal(out, ref), "mul path mismatch vs reference"

    # Offset path: out = x * mask + offset * (1 - mask).
    offset_np = 2.0 * (rng.rand(h, w) - 0.5)
    offset = jnp.asarray(offset_np, dtype=jnp.float32)
    out_off = jax.block_until_ready(apply_gridmask(x, mask, offset=offset))
    ref_off = x * mask[None, None] + offset[None, None] * (1.0 - mask[None, None])
    assert jnp.allclose(out_off, ref_off, atol=1e-6, rtol=1e-6), "offset path mismatch"

    print("KERNEL_OK")
</pallas_src>

<mosaic_0001>
module attributes {stable_mosaic.version = 11 : i64} {
  func.func @_gridmask_mul_kernel(%arg0: i32, %arg1: i32, %arg2: memref<8x256xf32, #tpu.memory_space<vmem>>, %arg3: memref<1x256xf32, #tpu.memory_space<vmem>>, %arg4: memref<8x256xf32, #tpu.memory_space<vmem>>) attributes {dimension_semantics = [#tpu.dimension_semantics<parallel>, #tpu.dimension_semantics<parallel>], iteration_bounds = array<i64: 1, 1>, scalar_prefetch = 0 : i64, scratch_operands = 0 : i64, tpu.core_type = #tpu.core_type<tc>, window_params = [{transform_indices = @transform_0, window_bounds = array<i64: 8, 256>}, {transform_indices = @transform_1, window_bounds = array<i64: 1, 256>}, {transform_indices = @transform_2, window_bounds = array<i64: 8, 256>}]} {
    %c0 = arith.constant 0 : index
    %c0_0 = arith.constant 0 : index
    %0 = vector.load %arg2[%c0, %c0_0] : memref<8x256xf32, #tpu.memory_space<vmem>>, vector<8x256xf32>
    %c0_1 = arith.constant 0 : index
    %c0_2 = arith.constant 0 : index
    %1 = vector.load %arg3[%c0_1, %c0_2] : memref<1x256xf32, #tpu.memory_space<vmem>>, vector<1x256xf32>
    %2 = vector.broadcast %1 : vector<1x256xf32> to vector<8x256xf32>
    %3 = arith.mulf %0, %2 : vector<8x256xf32>
    %c0_3 = arith.constant 0 : index
    %c0_4 = arith.constant 0 : index
    %4 = vector.load %arg4[%c0_3, %c0_4] : memref<8x256xf32, #tpu.memory_space<vmem>>, vector<8x256xf32>
    tpu.vector_store %arg4[%c0_3, %c0_4], %3 {strides = array<i32>} : memref<8x256xf32, #tpu.memory_space<vmem>>, vector<8x256xf32>,
    return
  }
  func.func @transform_0(%arg0: i32, %arg1: i32) -> (i32, i32) {
    %c0_i32 = arith.constant 0 : i32
    return %arg1, %arg0 : i32, i32
  }
  func.func @transform_1(%arg0: i32, %arg1: i32) -> (i32, i32) {
    %c0_i32 = arith.constant 0 : i32
    %c0_i32_0 = arith.constant 0 : i32
    return %c0_i32, %arg0 : i32, i32
  }
  func.func @transform_2(%arg0: i32, %arg1: i32) -> (i32, i32) {
    %c0_i32 = arith.constant 0 : i32
    return %arg1, %arg0 : i32, i32
  }
}

</mosaic_0001>

<bundles_post_ra>
// kernel: tpu_custom_call.1
= control target key start
LH: loop header
LB: loop body
LE: loop exit
PB: predicated region body
PF: predicated region fallthrough
CT: control target
= control target key end

     0   :  { %7 = vsyncpa [#allocation3], 0  ;;  %s151_s0 = inlined_call_operand.hbm [shape: f32[8,256], index: 0, kind: input, shape index: {}]   ;;  %s152_s1 = inlined_call_operand.vmem [shape: f32[1,256], index: 1, kind: input, shape index: {}]   ;;  %s153_s2 = inlined_call_operand.hbm [shape: f32[8,256], index: 2, kind: output, shape index: {}]  }
   0x1   :  { %8 = vsyncpa [#allocation4], 0  ;;  %s107_s9 = smov [#allocation2]   ;;  %s59_s13 = scalar_lea.hbm %s151_s0, 256 }
   0x2   :  { %s15_s10 = sshll.u32 %s107_s9, 4  ;;  %p60_p0 = scmp.ne.s32.totalorder %s151_s0, %s59_s13  ;;  %s16_s10 = int_to_ptr.vmem [resolvable:$true] %s15_s10 }
   0x3   :  { %p63_p1 = scmp.lt.u32.totalorder %s59_s13, %s151_s0 }
   0x5   :  { %p65_p2 = pnand %p63_p1, %p60_p0 }
   0x7   :  { %68 = shalt.err (!%p65_p2)
}
   0x8   :  { %s69_s18 = scalar_lea.vmem %s16_s10, 256  ;;  %p74_p4 = scmp.lt.s32.totalorder %s16_s10, %s16_s10 }
   0x9   :  { %p70_p3 = scmp.ne.s32.totalorder %s16_s10, %s69_s18  ;;  %p75_p5 = scmp.lt.s32.totalorder %s69_s18, %s69_s18 }
   0xb   :  { %p76_p6 = por %p75_p5, %p74_p4 }
   0xd   :  { %p77_p7 = pnand %p76_p6, %p70_p3 }
   0xf   :  { %80 = shalt.err (!%p77_p7)
}
  0x10   :  { %18 = dma.hbm_to_vmem [thread:$0]  %s151_s0, 256, %s16_s10, [#allocation3]  }
  0x11   :  { %103 = dma.done.wait [#allocation3], 256  }
  0x12   :  { %104 = vsyncadd [#allocation3], 4294967040  ;;  %v28_v0 = vlaneseq  ;;  %v24_v4 = vld [vmem:[#allocation2] sm:$0xff]  ;;  %v25_v6 = vld [vmem:[#allocation2 + $0x8] sm:$0xff]  ;;  %s108_s23 = smov [#allocation5]  }
  0x13   :  { %v26_v5 = vld [vmem:[%s152_s1] sm:$0x3]  ;;  %s48_s24 = sshll.u32 %s108_s23, 4  ;;  %s49_s24 = int_to_ptr.vmem [resolvable:$true] %s48_s24 }
  0x14   :  { %v29_v1 = vshrl.u32 %v28_v0, 7  ;;  %s81_s0 = scalar_lea.vmem %s49_s24, 256  ;;  %p86_p9 = scmp.lt.s32.totalorder %s49_s24, %s49_s24 }
  0x15   :  { %p82_p8 = scmp.ne.s32.totalorder %s49_s24, %s81_s0  ;;  %p87_p10 = scmp.lt.s32.totalorder %s81_s0, %s81_s0 }
  0x16   :  { %v30_v2 = vsub.s32 0, %v29_v1  ;;  %v34_v3 = vsub.s32 1, %v29_v1 }
  0x17   :  { %p88_p11 = por %p87_p10, %p86_p9 }
  0x18   :  { %v31_v7 = vrot.slane %v26_v5, %v30_v2  ;;  %v35_v8 = vrot.slane %v26_v5, %v34_v3 }
  0x19   :  { %p89_p12 = pnand %p88_p11, %p82_p8 }
  0x1a   :  { %v38_v9 = vmul.f32 %v31_v7, %v24_v4  ;;  %v39_v10 = vmul.f32 %v35_v8, %v25_v6 }
  0x1c   :  { %40 = vst [vmem:[#allocation5] sm:$0xff] %v38_v9  ;;  %41 = vst [vmem:[#allocation5 + $0x8] sm:$0xff] %v39_v10 }
  0x1d   :  { %92 = shalt.err (!%p89_p12)
}
  0x1e   :  { %s93_s1 = scalar_lea.hbm %s153_s2, 256 }
  0x1f   :  { %p94_p13 = scmp.ne.s32.totalorder %s153_s2, %s93_s1  ;;  %p97_p0 = scmp.lt.u32.totalorder %s93_s1, %s153_s2 }
  0x21   :  { %p99_p1 = pnand %p97_p0, %p94_p13 }
  0x23   :  { %102 = shalt.err (!%p99_p1)
}
  0x24   :  { %51 = dma.vmem_to_hbm [thread:$0]  %s49_s24, 256, %s153_s2, [#allocation4]  }
  0x25   :  { %105 = dma.done.wait [#allocation4], 256  }
  0x26   :  { %106 = vsyncadd [#allocation4], 4294967040 }
  0x27   :  { %55 = vsyncpa [#allocation3], 1 }
  0x28   :  { %56 = vsyncpa [#allocation4], 1 }

</bundles_post_ra>
